<compile_context>
chip_gen: v5e
topology: v5e:2x2
jax: 0.10.0
libtpu: 0.0.40
codegen_flags: <defaults>
</compile_context>

<pallas_src>
import jax
import jax.numpy as jnp
from jax.experimental import pallas as pl
from jax.experimental.pallas import tpu as pltpu


def _flatten_copy_kernel(x_hbm_ref, o_hbm_ref, sem):
    # x_hbm_ref / o_hbm_ref: full (B, C*H*W) arrays left in HBM (pl.ANY).
    # One bulk DMA copies the bytes; no VMEM staging, no vreg traffic.
    copy = pltpu.make_async_copy(x_hbm_ref, o_hbm_ref, sem.at[0])
    copy.start()
    copy.wait()


def flatten(x: jax.Array) -> jax.Array:
    """Pallas equivalent of Flatten().forward(x): (B, ...) -> (B, prod(rest))."""
    B = x.shape[0]
    flat = 1
    for d in x.shape[1:]:
        flat *= d

    # Row-major flatten of a contiguous array is a free metadata reshape; doing
    # it in the wrapper presents the kernel with a lane-dense (B, flat) slab so
    # the kernel itself is a byte-identical copy.
    x2d = x.reshape(B, flat)

    return pl.pallas_call(
        _flatten_copy_kernel,
        out_shape=jax.ShapeDtypeStruct((B, flat), x.dtype),
        in_specs=[pl.BlockSpec(memory_space=pl.ANY)],   # raw HBM ref, no auto-DMA
        out_specs=pl.BlockSpec(memory_space=pl.ANY),    # raw HBM ref, DMA writes it
        scratch_shapes=[pltpu.SemaphoreType.DMA((1,))],  # DMA completion semaphore
    )(x2d)


if __name__ == "__main__":
    key = jax.random.PRNGKey(0)
    # Small NCHW input consistent with a conv-net activation: B=2, C=4, H=W=16.
    x = jax.random.normal(key, (2, 4, 16, 16), dtype=jnp.float32)

    out = jax.block_until_ready(flatten(x))

    # Reference: plain JAX reshape (same semantics as torch .view(B, -1)).
    ref = x.reshape(x.shape[0], -1)
    assert out.shape == (2, 4 * 16 * 16), out.shape
    assert out.dtype == x.dtype
    assert bool(jnp.all(out == ref)), "Pallas flatten mismatch vs reference"

    print("KERNEL_OK")
</pallas_src>

<mosaic_0001>
module attributes {stable_mosaic.version = 11 : i64} {
  func.func @_flatten_copy_kernel(%arg0: memref<2x1024xf32, #tpu.memory_space<any>>, %arg1: memref<2x1024xf32, #tpu.memory_space<any>>, %arg2: memref<1x!tpu.dma_semaphore, #tpu.memory_space<semaphore_mem>>) attributes {dimension_semantics = [], scalar_prefetch = 0 : i64, scratch_operands = 1 : i64, tpu.core_type = #tpu.core_type<tc>} {
    %c0_i32 = arith.constant 0 : i32
    %0 = tpu.memref_slice %arg2[%c0_i32] : memref<1x!tpu.dma_semaphore, #tpu.memory_space<semaphore_mem>> -> memref<1x!tpu.dma_semaphore, #tpu.memory_space<semaphore_mem>>
    %1 = tpu.memref_squeeze %0 : memref<1x!tpu.dma_semaphore, #tpu.memory_space<semaphore_mem>> -> memref<!tpu.dma_semaphore, #tpu.memory_space<semaphore_mem>>
    tpu.enqueue_dma source(%arg0 : memref<2x1024xf32, #tpu.memory_space<any>>) target(%arg1 : memref<2x1024xf32, #tpu.memory_space<any>>) target_semaphore(%1 : memref<!tpu.dma_semaphore, #tpu.memory_space<semaphore_mem>>)
    %c0_i32_0 = arith.constant 0 : i32
    %2 = tpu.memref_slice %arg2[%c0_i32_0] : memref<1x!tpu.dma_semaphore, #tpu.memory_space<semaphore_mem>> -> memref<1x!tpu.dma_semaphore, #tpu.memory_space<semaphore_mem>>
    %3 = tpu.memref_squeeze %2 : memref<1x!tpu.dma_semaphore, #tpu.memory_space<semaphore_mem>> -> memref<!tpu.dma_semaphore, #tpu.memory_space<semaphore_mem>>
    tpu.wait_dma2 semaphore(%3 : memref<!tpu.dma_semaphore, #tpu.memory_space<semaphore_mem>>) src(%arg0 : memref<2x1024xf32, #tpu.memory_space<any>>) dst(%arg1 : memref<2x1024xf32, #tpu.memory_space<any>>)
    return
  }
}

</mosaic_0001>

<bundles_post_ra>
// kernel: tpu_custom_call.1
= control target key start
LH: loop header
LB: loop body
LE: loop exit
PB: predicated region body
PF: predicated region fallthrough
CT: control target
= control target key end

     0   :  { %s33_s12 = smov [#allocation2]   ;;  %s34_s13 = smov [#allocation3]   ;;  %s52_s0 = inlined_call_operand.hbm [shape: f32[2,1024], index: 0, kind: input, shape index: {}]   ;;  %s53_s1 = inlined_call_operand.hbm [shape: f32[2,1024], index: 1, kind: output, shape index: {}]  }
   0x1   :  { %s10_s8 = sshll.u32 %s52_s0, 4  ;;  %s12_s11 = sshll.u32 %s53_s1, 4  ;;  %s11_s8 = int_to_ptr.hbm [resolvable:$true] %s10_s8  ;;  %s13_s11 = int_to_ptr.hbm [resolvable:$true] %s12_s11 }
   0x2   :  { %s35_s14 = smov 0  }
   0x3   :  { %16 = dma.general %s11_s8, 256, %s13_s11, %s33_s12, %s34_s13, [#allocation4], %s35_s14, 0  }
   0x4   :  { %31 = dma.done.wait [#allocation2], 256 }
   0x5   :  { %32 = vsyncadd [#allocation2], 4294967040 }
   0x6   :  { %21 = vsyncmov [#allocation2] }
   0x9   :  { %s22_s15 = vpop.sfrf %21 }
   0xa   :  { %p27_p0 = scmp.ne.s32.totalorder %s22_s15, 0 }
   0xc   :  { %26 = shalt.err (%p27_p0)  }

</bundles_post_ra>
